<compile_context>
chip_gen: v7x
topology: tpu7x:2x2x1
jax: 0.10.0
libtpu: 0.0.40
codegen_flags: <defaults>
</compile_context>

<pallas_src>
import math
from functools import partial

import jax
import jax.numpy as jnp
from jax import lax
from jax.experimental import pallas as pl
from jax.experimental.pallas import tpu as pltpu

BN_EPS = 1e-5
BF16 = jnp.bfloat16
F32 = jnp.float32


def _rup(x, m):
    return (x + m - 1) // m * m


def _vmem_limit(est_bytes):
    # generation-aware cap: leave headroom on v7x (64 MiB physical VMEM/TC).
    return int(min(32 * 1024 * 1024,
                   max(2 * int(est_bytes) + (4 << 20), 16 * 1024 * 1024)))


def _plan_m(m, cap):
    """Pick (tm, n_outer, n_inner) M tiling: big tiles, >=2 tiles when work is
    non-trivial so v7x megacore gets both cores busy."""
    m8 = _rup(max(m, 8), 8)
    ntiles = -(-m8 // cap)
    if m8 > 256 and ntiles < 2:
        ntiles = 2
    if ntiles > 1 and ntiles % 2:
        ntiles += 1
    tm = _rup(-(-m8 // ntiles), 8)
    n_outer = 2 if ntiles % 2 == 0 else 1
    n_inner = ntiles // n_outer
    return tm, n_outer, n_inner


# ----------------------------------------------------------------------------
# Pallas kernel 1: fused stride-1 3D convolution (im2col fused into the GEMM).
#
# Padded activation lives in HBM as a flat channels-last matrix
# (rows = (B+slack)*Dp*Hp*Wp, cols = Cin).  Output row r needs, for kernel tap
# (a,b,c), input row r + d*(a*Hp*Wp + b*Wp + c).  Grid = (outer M, inner M,
# kd planes).  Each step DMAs one shifted row window (double buffered), lane-
# stacks the 9 (b,c) taps into a (tm, 9*Ci) LHS and issues one MXU dot against
# the plane's bf16 weight block (BN scale folded in), accumulating in f32.
# ----------------------------------------------------------------------------
def _fused_conv3d_kernel(w_ref, b_ref, x_hbm, o_ref, xbuf, sem, acc_ref, *,
                         kd, kk, cin, tm, win, n_inner, plane_stride,
                         row_stride, dil, relu):
    o_i = pl.program_id(0)
    j = pl.program_id(1)
    a = pl.program_id(2)
    tile = o_i * n_inner + j
    base = tile * tm
    t = j * kd + a                     # step index within this outer block
    slot = t % 2
    nslot = 1 - slot
    s_off = pl.multiple_of(slot * win, 8)
    n_off = pl.multiple_of(nslot * win, 8)
    src = base + a * plane_stride

    # Prime the first window of this outer block (exposed once per block;
    # megacore-safe: never crosses the 'parallel' outer axis).
    @pl.when(t == 0)
    def _prime():
        pltpu.make_async_copy(x_hbm.at[pl.ds(base, win)],
                              xbuf.at[pl.ds(0, win)], sem.at[0]).start()

    # Wait on this plane's window; descriptor matches the started copy.
    pltpu.make_async_copy(x_hbm.at[pl.ds(src, win)],
                          xbuf.at[pl.ds(s_off, win)], sem.at[slot]).wait()

    # Prefetch next step's window (next plane, or plane 0 of the next inner
    # tile) into the other slot while this plane computes.
    @pl.when(a + 1 < kd)
    def _pref_plane():
        pltpu.make_async_copy(x_hbm.at[pl.ds(src + plane_stride, win)],
                              xbuf.at[pl.ds(n_off, win)],
                              sem.at[nslot]).start()

    @pl.when(jnp.logical_and(a == kd - 1, j + 1 < n_inner))
    def _pref_tile():
        pltpu.make_async_copy(x_hbm.at[pl.ds(base + tm, win)],
                              xbuf.at[pl.ds(n_off, win)],
                              sem.at[nslot]).start()

    @pl.when(a == 0)
    def _init():
        acc_ref[...] = jnp.zeros_like(acc_ref)

    # Tap-stacked contraction: one dot per kernel-depth plane with K=kk*kk*cin.
    taps = []
    for bb in range(kk):
        for cc in range(kk):
            off = bb * row_stride + cc * dil
            taps.append(xbuf[pl.ds(s_off + off, tm), :])
    lhs = jnp.concatenate(taps, axis=-1)               # (tm, kk*kk*cin) bf16
    acc_ref[...] += jnp.dot(lhs, w_ref[0], preferred_element_type=jnp.float32)

    @pl.when(a == kd - 1)
    def _finish():
        y = acc_ref[...] + b_ref[...]
        if relu:
            y = jnp.maximum(y, 0.0)
        o_ref[...] = y.astype(o_ref.dtype)


def conv3d_fused_s1(x, p, *, padding, dilation, relu, out_dtype=BF16):
    """Stride-1 3D conv + BN affine + optional ReLU. x: (B, D, H, W, Cin)."""
    w, scale, shift = p['w'], p['s'], p['b']            # w: (Co, Ci, k, k, k)
    Co, Ci, kd, kh, kw = w.shape
    B, D, H, W, C = x.shape
    assert C == Ci and kd == kh == kw
    d, pA = dilation, padding
    Dp, Hp, Wp = D + 2 * pA, H + 2 * pA, W + 2 * pA
    Do, Ho, Wo = Dp - d * (kd - 1), Hp - d * (kh - 1), Wp - d * (kw - 1)

    per_batch = Dp * Hp * Wp
    mg = B * per_batch
    cap = 2048 if Ci <= 32 else 1024
    tm, n_outer, n_inner = _plan_m(mg, cap)
    ntiles = n_outer * n_inner
    mp = tm * ntiles
    win = _rup(tm + (kh - 1) * d * Wp + (kw - 1) * d, 8)
    plane_stride = d * Hp * Wp
    rows_needed = mp + (kd - 1) * plane_stride + win
    extra_b = max(0, -(-(rows_needed - mg) // per_batch))

    # Single pad: spatial padding + row slack folded into batch padding.
    xp = jnp.pad(x.astype(BF16),
                 ((0, extra_b), (pA, pA), (pA, pA), (pA, pA), (0, 0)))
    xf = xp.reshape((B + extra_b) * per_batch, Ci)

    K9 = kh * kw * Ci
    # BN scale folded into the weight columns; only a bias vector remains.
    wm = (w.astype(F32) * scale[:, None, None, None, None])
    wm = wm.transpose(2, 3, 4, 1, 0).reshape(kd, K9, Co).astype(BF16)
    bias = shift.reshape(1, Co).astype(F32)
    Co_p = max(Co, 8)
    if Co_p != Co:
        wm = jnp.pad(wm, ((0, 0), (0, 0), (0, Co_p - Co)))
        bias = jnp.pad(bias, ((0, 0), (0, Co_p - Co)))

    kernel = partial(_fused_conv3d_kernel, kd=kd, kk=kh, cin=Ci, tm=tm,
                     win=win, n_inner=n_inner, plane_stride=plane_stride,
                     row_stride=d * Wp, dil=d, relu=relu)
    osize = jnp.dtype(out_dtype).itemsize
    vmem_est = (2 * K9 * Co_p * 2 + 2 * Co_p * 4 + 2 * win * Ci * 2
                + tm * Co_p * 4 + 2 * tm * Co_p * osize + tm * K9 * 2)
    flops = 2 * mp * kd * K9 * Co_p
    bytes_accessed = (ntiles * kd * win * Ci * 2 + kd * K9 * Co_p * 2
                      + mp * Co_p * osize)

    out = pl.pallas_call(
        kernel,
        out_shape=jax.ShapeDtypeStruct((mp, Co_p), out_dtype),
        grid_spec=pltpu.PrefetchScalarGridSpec(
            num_scalar_prefetch=0,
            grid=(n_outer, n_inner, kd),
            in_specs=[
                pl.BlockSpec((1, K9, Co_p), lambda o, j, a: (a, 0, 0)),
                pl.BlockSpec((1, Co_p), lambda o, j, a: (0, 0)),
                pl.BlockSpec(memory_space=pl.ANY),
            ],
            out_specs=pl.BlockSpec((tm, Co_p),
                                   lambda o, j, a: (o * n_inner + j, 0)),
            scratch_shapes=[pltpu.VMEM((2 * win, Ci), BF16),
                            pltpu.SemaphoreType.DMA((2,)),
                            pltpu.VMEM((tm, Co_p), F32)]),
        compiler_params=pltpu.CompilerParams(
            dimension_semantics=("parallel", "arbitrary", "arbitrary"),
            vmem_limit_bytes=_vmem_limit(vmem_est)),
        cost_estimate=pl.CostEstimate(flops=int(flops), transcendentals=0,
                                      bytes_accessed=int(bytes_accessed)),
    )(wm, bias, xf)

    out = out[:mg, :Co].reshape(B, Dp, Hp, Wp, Co)[:, :Do, :Ho, :Wo, :]
    return out


# ----------------------------------------------------------------------------
# Pallas kernel 2: full-K, weight-resident bf16 GEMM + bias + optional ReLU
# (used for im2col of stride-2 convs and the small 2D nets).
# ----------------------------------------------------------------------------
def _mm_kernel(x_ref, w_ref, b_ref, o_ref, *, relu):
    y = jnp.dot(x_ref[...], w_ref[...], preferred_element_type=jnp.float32)
    y = y + b_ref[...]
    if relu:
        y = jnp.maximum(y, 0.0)
    o_ref[...] = y.astype(o_ref.dtype)


def pallas_matmul_bias(x, w, bias, *, relu=False, out_dtype=F32):
    M, K = x.shape
    K2, N = w.shape
    assert K == K2
    tm, n_outer, n_inner = _plan_m(M, 1024)
    ntiles = n_outer * n_inner
    mp = tm * ntiles
    xp = jnp.pad(x.astype(BF16), ((0, mp - M), (0, 0)))
    wp = w.astype(BF16)
    bp = bias.reshape(1, N).astype(F32)
    Np = max(N, 8)
    if Np != N:
        wp = jnp.pad(wp, ((0, 0), (0, Np - N)))
        bp = jnp.pad(bp, ((0, 0), (0, Np - N)))
    osize = jnp.dtype(out_dtype).itemsize
    vmem_est = 2 * tm * K * 2 + 2 * K * Np * 2 + 2 * Np * 4 + 2 * tm * Np * osize
    out = pl.pallas_call(
        partial(_mm_kernel, relu=relu),
        out_shape=jax.ShapeDtypeStruct((mp, Np), out_dtype),
        grid_spec=pltpu.PrefetchScalarGridSpec(
            num_scalar_prefetch=0,
            grid=(ntiles,),
            in_specs=[pl.BlockSpec((tm, K), lambda i: (i, 0)),
                      pl.BlockSpec((K, Np), lambda i: (0, 0)),
                      pl.BlockSpec((1, Np), lambda i: (0, 0))],
            out_specs=pl.BlockSpec((tm, Np), lambda i: (i, 0))),
        compiler_params=pltpu.CompilerParams(
            dimension_semantics=("parallel",),
            vmem_limit_bytes=_vmem_limit(vmem_est)),
        cost_estimate=pl.CostEstimate(
            flops=int(2 * mp * K * Np), transcendentals=0,
            bytes_accessed=int(mp * K * 2 + K * Np * 2 + mp * Np * osize)),
    )(xp, wp, bp)
    return out[:M, :N]


# ----------------------------------------------------------------------------
# Convolution wrappers (all activations are carried channels-last, bf16).
# ----------------------------------------------------------------------------
def conv3d(x, p, *, stride=1, dilation=1, padding=1, relu=False, out_dtype=BF16):
    if stride == 1:
        return conv3d_fused_s1(x, p, padding=padding, dilation=dilation,
                               relu=relu, out_dtype=out_dtype)
    return conv3d_im2col(x, p, stride=stride, dilation=dilation,
                         padding=padding, relu=relu, out_dtype=out_dtype)


def conv3d_im2col(x, p, *, stride, dilation, padding, relu, out_dtype=BF16):
    # TODO(synk): stride-2 convs still materialise a 27x im2col tensor in HBM.
    w, scale, shift = p['w'], p['s'], p['b']            # (Co, Ci, k, k, k)
    Co, Ci, kd, kh, kw = w.shape
    B, D, H, W, C = x.shape
    d, st, pA = dilation, stride, padding
    xp = jnp.pad(x.astype(BF16),
                 ((0, 0), (pA, pA), (pA, pA), (pA, pA), (0, 0)))
    Do = (D + 2 * pA - d * (kd - 1) - 1) // st + 1
    Ho = (H + 2 * pA - d * (kh - 1) - 1) // st + 1
    Wo = (W + 2 * pA - d * (kw - 1) - 1) // st + 1
    pats = []
    for a in range(kd):
        for b in range(kh):
            for c in range(kw):
                pats.append(xp[:, a * d: a * d + (Do - 1) * st + 1: st,
                               b * d: b * d + (Ho - 1) * st + 1: st,
                               c * d: c * d + (Wo - 1) * st + 1: st, :])
    pat = jnp.concatenate(pats, axis=-1).reshape(
        B * Do * Ho * Wo, kd * kh * kw * Ci)
    wm = (w.astype(F32) * scale[:, None, None, None, None])
    wm = wm.transpose(2, 3, 4, 1, 0).reshape(kd * kh * kw * Ci, Co)
    out = pallas_matmul_bias(pat, wm, shift, relu=relu, out_dtype=out_dtype)
    return out.reshape(B, Do, Ho, Wo, Co)


def conv_transpose3d(x, p, *, stride=2, dilation=1, padding=1,
                     output_padding=1, relu=False, out_dtype=BF16):
    w, scale, shift = p['w'], p['s'], p['b']            # (Ci, Co, k, k, k)
    B, D, H, W, C = x.shape
    k = w.shape[2]
    lo = dilation * (k - 1) - padding
    assert lo >= 0, "unsupported ConvTranspose3d padding configuration"
    hi = lo + output_padding
    up = jnp.zeros((B, (D - 1) * stride + 1, (H - 1) * stride + 1,
                    (W - 1) * stride + 1, C), x.dtype)
    up = up.at[:, ::stride, ::stride, ::stride, :].set(x)
    up = jnp.pad(up, ((0, 0), (lo, hi), (lo, hi), (lo, hi), (0, 0)))
    w_eq = jnp.flip(w, axis=(2, 3, 4)).transpose(1, 0, 2, 3, 4)   # (Co,Ci,k,k,k)
    return conv3d_fused_s1(up, dict(w=w_eq, s=scale, b=shift),
                           padding=0, dilation=dilation, relu=relu,
                           out_dtype=out_dtype)


def conv2d(x, p, *, stride=1, dilation=1, padding=1, relu=False, out_dtype=F32):
    # x: (B, H, W, C) channels-last.
    # TODO(synk): Cin=1 / Cout=1 layers would be better served by a direct VPU
    # conv instead of an MXU GEMM; kept on the GEMM path for simplicity.
    w, scale, shift = p['w'], p['s'], p['b']            # (Co, Ci, kh, kw)
    Co, Ci, kh, kw = w.shape
    B, H, W, C = x.shape
    d, st, pA = dilation, stride, padding
    xp = jnp.pad(x.astype(BF16), ((0, 0), (pA, pA), (pA, pA), (0, 0)))
    Ho = (H + 2 * pA - d * (kh - 1) - 1) // st + 1
    Wo = (W + 2 * pA - d * (kw - 1) - 1) // st + 1
    pats = []
    for a in range(kh):
        for b in range(kw):
            pats.append(xp[:, a * d: a * d + (Ho - 1) * st + 1: st,
                           b * d: b * d + (Wo - 1) * st + 1: st, :])
    pat = jnp.concatenate(pats, axis=-1).reshape(B * Ho * Wo, kh * kw * Ci)
    wm = (w.astype(F32) * scale[:, None, None, None])
    wm = wm.transpose(2, 3, 1, 0).reshape(kh * kw * Ci, Co)
    out = pallas_matmul_bias(pat, wm, shift, relu=relu, out_dtype=out_dtype)
    return out.reshape(B, Ho, Wo, Co)


# ----------------------------------------------------------------------------
# Pallas kernel 3: softmax over disparity + disparity regression + confidence.
# Consumes the natural (B, num_disp, H*W) layout (no full-size transpose);
# pixels on the 128-lane axis; one log per pixel for the entropy channel.
# ----------------------------------------------------------------------------
def _softmax_reg_kernel(cost_ref, disp_ref, prob_ref, pred_ref, conf_ref, *, nd):
    c = cost_ref[0]                                     # (nd, tms) f32
    d = disp_ref[...]                                   # (nd, 1)
    m = jnp.max(c, axis=0, keepdims=True)
    cm = c - m
    e = jnp.exp(cm)
    s = jnp.sum(e, axis=0, keepdims=True)
    inv = pl.reciprocal(s, approx=True)
    p = e * inv
    prob_ref[0] = p
    pred_ref[0] = jnp.sum(p * d, axis=0, keepdims=True)
    # TODO(synk): compute_confidence source not provided; emit 4 standard
    # confidence channels (max prob, 3-bin mass around mode, 5-bin mass,
    # 1 - normalized entropy).
    iota = lax.broadcasted_iota(jnp.float32, p.shape, 0)
    pmax = jnp.max(p, axis=0, keepdims=True)
    amax = jnp.min(jnp.where(p >= pmax, iota, float(nd)), axis=0, keepdims=True)
    win3 = jnp.sum(jnp.where(jnp.abs(iota - amax) <= 1.0, p, 0.0),
                   axis=0, keepdims=True)
    win5 = jnp.sum(jnp.where(jnp.abs(iota - amax) <= 2.0, p, 0.0),
                   axis=0, keepdims=True)
    # entropy without per-element log: H = log(s) - (1/s) * sum(e * (c - m))
    ent = jnp.log(s) - inv * jnp.sum(e * cm, axis=0, keepdims=True)
    conf_ref[0] = jnp.concatenate(
        [pmax, win3, win5, 1.0 - ent * (1.0 / math.log(float(nd)))], axis=0)


def softmax_disp_regression(cost, disp_list):
    # cost: (B, Dn, H, W) f32 -> prob (B,Dn,H,W), pred (B,1,H,W), conf (B,4,H,W)
    B, Dn, H, W = cost.shape
    P = H * W
    tms = min(4096, _rup(P, 128))
    Pp = _rup(P, tms)
    ct = jnp.pad(cost.reshape(B, Dn, P).astype(F32),
                 ((0, 0), (0, 0), (0, Pp - P)))
    dl = disp_list.reshape(Dn, 1).astype(F32)
    vmem_est = 2 * Dn * tms * 4 * 2 + 2 * 6 * tms * 4
    prob, pred, conf = pl.pallas_call(
        partial(_softmax_reg_kernel, nd=Dn),
        out_shape=(jax.ShapeDtypeStruct((B, Dn, Pp), F32),
                   jax.ShapeDtypeStruct((B, 1, Pp), F32),
                   jax.ShapeDtypeStruct((B, 4, Pp), F32)),
        grid_spec=pltpu.PrefetchScalarGridSpec(
            num_scalar_prefetch=0,
            grid=(B, Pp // tms),
            in_specs=[pl.BlockSpec((1, Dn, tms), lambda b, i: (b, 0, i)),
                      pl.BlockSpec((Dn, 1), lambda b, i: (0, 0))],
            out_specs=[pl.BlockSpec((1, Dn, tms), lambda b, i: (b, 0, i)),
                       pl.BlockSpec((1, 1, tms), lambda b, i: (b, 0, i)),
                       pl.BlockSpec((1, 4, tms), lambda b, i: (b, 0, i))]),
        compiler_params=pltpu.CompilerParams(
            dimension_semantics=("parallel", "parallel"),
            vmem_limit_bytes=_vmem_limit(vmem_est)),
        cost_estimate=pl.CostEstimate(
            flops=int(B * Pp * Dn * 12),
            transcendentals=int(B * Pp * (Dn + 1)),
            bytes_accessed=int(B * Pp * (2 * Dn + 6) * 4)),
    )(ct, dl)
    prob = prob[:, :, :P].reshape(B, Dn, H, W)
    pred = pred[:, :, :P].reshape(B, 1, H, W)
    conf = conf[:, :, :P].reshape(B, 4, H, W)
    return prob, pred, conf


# ----------------------------------------------------------------------------
# Parameter initialisation (deterministic, mirrors the module's init scheme)
# ----------------------------------------------------------------------------
def _bn_affine(cout):
    # eval-mode BN with running_mean=0, running_var=1, weight=1, bias=0
    scale = jnp.full((cout,), 1.0 / math.sqrt(1.0 + BN_EPS), F32)
    shift = jnp.zeros((cout,), F32)
    return scale, shift


def make_conv3d_params(key, cin, cout, k=3, bn=True):
    std = math.sqrt(2.0 / (k * k * k * cout))
    w = std * jax.random.normal(key, (cout, cin, k, k, k), F32)
    if bn:
        s, b = _bn_affine(cout)
    else:
        s, b = jnp.ones((cout,), F32), jnp.zeros((cout,), F32)
    return dict(w=w, s=s, b=b)


def make_deconv3d_params(key, cin, cout, k=3):
    std = math.sqrt(2.0 / (k * k * k * cout))
    w = std * jax.random.normal(key, (cin, cout, k, k, k), F32)
    s, b = _bn_affine(cout)
    return dict(w=w, s=s, b=b)


def make_conv2d_params(key, cin, cout, k=3, bn=True):
    std = math.sqrt(2.0 / (k * k * cout))
    w = std * jax.random.normal(key, (cout, cin, k, k), F32)
    if bn:
        s, b = _bn_affine(cout)
    else:
        s, b = jnp.ones((cout,), F32), jnp.zeros((cout,), F32)
    return dict(w=w, s=s, b=b)


def init_params(key, df_in_channels, df_channels):
    keys = iter(jax.random.split(key, 64))
    p = {}
    # TODO(synk): FeatureExtraction (PSMNet CNN+SPP) source not provided;
    # stand-in: 3 conv2d+BN layers producing 32-ch features at 1/4 resolution.
    p['feat'] = [make_conv2d_params(next(keys), 1, 16),
                 make_conv2d_params(next(keys), 16, 32),
                 make_conv2d_params(next(keys), 32, 32)]
    p['dres0'] = [make_conv3d_params(next(keys), 64, 32),
                  make_conv3d_params(next(keys), 32, 32)]
    p['dres1'] = [make_conv3d_params(next(keys), 32, 32),
                  make_conv3d_params(next(keys), 32, 32)]
    for name in ('dres2', 'dres3', 'dres4'):
        p[name] = dict(
            c1=make_conv3d_params(next(keys), 32, 64),
            c2=make_conv3d_params(next(keys), 64, 64),
            c3=make_conv3d_params(next(keys), 64, 64),
            c4=make_conv3d_params(next(keys), 64, 64),
            c5=make_deconv3d_params(next(keys), 64, 64),
            c6=make_deconv3d_params(next(keys), 64, 32),
        )
    for name in ('classif1', 'classif2', 'classif3'):
        p[name] = [make_conv3d_params(next(keys), 32, 32),
                   make_conv3d_params(next(keys), 32, 1, bn=False)]
    # TODO(synk): DFNet source not provided; stand-in: 3-layer 2D conv net.
    p['dfnet'] = [make_conv2d_params(next(keys), df_in_channels, df_channels),
                  make_conv2d_params(next(keys), df_channels, df_channels),
                  make_conv2d_params(next(keys), df_channels, 1, bn=False)]
    return p


# ----------------------------------------------------------------------------
# Network forward (eval mode)
# ----------------------------------------------------------------------------
def feature_extraction(params, img_nchw):
    x = img_nchw.transpose(0, 2, 3, 1)                  # NHWC
    x = conv2d(x, params[0], stride=2, relu=True, out_dtype=BF16)
    x = conv2d(x, params[1], stride=2, relu=True, out_dtype=BF16)
    x = conv2d(x, params[2], stride=1, relu=False, out_dtype=BF16)
    return x                                            # (B, H/4, W/4, 32)


def dfnet(params, x_nchw):
    x = x_nchw.transpose(0, 2, 3, 1)
    x = conv2d(x, params[0], relu=True, out_dtype=BF16)
    x = conv2d(x, params[1], relu=True, out_dtype=BF16)
    x = conv2d(x, params[2], relu=False, out_dtype=F32)
    return x.transpose(0, 3, 1, 2)                      # (B, 1, H, W)


def hourglass_fwd(p, x, presqu, postqu, dilation):
    out = conv3d(x, p['c1'], stride=2, dilation=dilation, padding=dilation,
                 relu=True)
    pre = conv3d(out, p['c2'], stride=1, dilation=dilation, padding=dilation,
                 relu=False)
    pre = jax.nn.relu(pre + postqu) if postqu is not None else jax.nn.relu(pre)
    out = conv3d(pre, p['c3'], stride=2, dilation=dilation, padding=dilation,
                 relu=True)
    out = conv3d(out, p['c4'], stride=1, dilation=dilation, padding=dilation,
                 relu=True)
    c5 = conv_transpose3d(out, p['c5'], stride=2, dilation=dilation,
                          padding=dilation, output_padding=1, relu=False)
    post = jax.nn.relu(c5 + presqu) if presqu is not None else jax.nn.relu(c5 + pre)
    out = conv_transpose3d(post, p['c6'], stride=2, dilation=dilation,
                           padding=dilation, output_padding=1, relu=False)
    return out, pre, post


def classif_fwd(p, x):
    x = conv3d(x, p[0], relu=True)
    x = conv3d(x, p[1], relu=False, out_dtype=F32)
    return x                                            # (B, D, H, W, 1)


def build_cost_volume(ref_f, tgt_f, disp4, set_zero):
    # ref_f/tgt_f: (B, H, W, C) bf16.  Equivalent of grid_sample
    # (align_corners=True, padding_mode='zeros'): y sampled exactly, x shifted
    # by disp4 with 1D bilinear interpolation.  Built entirely in bf16.
    B, H, W, C = ref_f.shape
    D = disp4.shape[0]
    w_idx = jnp.arange(W, dtype=jnp.float32)
    x = w_idx[None, :] - disp4[:, None]                 # (D, W)
    x0 = jnp.floor(x)
    w1 = (x - x0).astype(BF16)
    w0 = (1.0 - (x - x0)).astype(BF16)
    tgt_b = tgt_f.astype(BF16)

    def gather(xi):
        valid = ((xi >= 0) & (xi <= W - 1)).astype(BF16)
        xc = jnp.clip(xi, 0, W - 1).astype(jnp.int32)
        g = tgt_b[:, :, xc, :]                          # (B, H, D, W, C) bf16
        return g * valid[None, None, :, :, None]

    tgt = (gather(x0) * w0[None, None, :, :, None]
           + gather(x0 + 1.0) * w1[None, None, :, :, None])
    tgt = tgt.transpose(0, 2, 1, 3, 4)                  # (B, D, H, W, C)
    ref = jnp.broadcast_to(ref_f.astype(BF16)[:, None], (B, D, H, W, C))
    if set_zero:
        mask = (w_idx[None, :] > disp4[:, None]).astype(BF16)      # (D, W)
        ref = ref * mask[None, :, None, :, None]
    return jnp.concatenate([ref, tgt], axis=-1)                    # bf16


def psmnet_forward(params, img_l, img_r, cfg):
    min_disp, max_disp, num_disp = cfg['min_disp'], cfg['max_disp'], cfg['num_disp']
    dilation = cfg['dilation']
    nd4 = num_disp // 4
    ref_f = feature_extraction(params['feat'], img_l)
    tgt_f = feature_extraction(params['feat'], img_r)
    B, H, W, _ = ref_f.shape
    disp_list = jnp.linspace(min_disp, max_disp, num_disp)
    disp4 = jnp.linspace(min_disp, max_disp, nd4) / 4.0
    cost = build_cost_volume(ref_f, tgt_f, disp4, cfg['set_zero'])

    c0 = conv3d(cost, params['dres0'][0], relu=True)
    c0 = conv3d(c0, params['dres0'][1], relu=True)
    c1 = conv3d(c0, params['dres1'][0], relu=True)
    c1 = conv3d(c1, params['dres1'][1], relu=False)
    cost0 = c1 + c0

    out1, pre1, post1 = hourglass_fwd(params['dres2'], cost0, None, None, dilation)
    out1 = out1 + cost0
    out2, pre2, post2 = hourglass_fwd(params['dres3'], out1, pre1, post1, dilation)
    out2 = out2 + cost0
    out3, pre3, post3 = hourglass_fwd(params['dres4'], out2, pre1, post2, dilation)
    out3 = out3 + cost0

    cost1 = classif_fwd(params['classif1'], out1)
    cost2 = classif_fwd(params['classif2'], out2) + cost1
    cost3 = classif_fwd(params['classif3'], out3) + cost2

    # eval mode: only the cost3 branch is materialised (training branch skipped)
    cost3 = cost3[..., 0]                                       # (B, D4, H, W)
    cost3 = jax.image.resize(cost3, (B, num_disp, 4 * H, 4 * W),
                             method='trilinear')
    prob_cost3, pred3, conf_raw = softmax_disp_regression(cost3, disp_list)
    return dict(pred3=pred3, prob_cost3=prob_cost3), conf_raw


def psmnet_dilation_df_forward(params, data_batch, cfg, df=True):
    pred_dict, conf_map = psmnet_forward(params, data_batch['img_l'],
                                         data_batch['img_r'], cfg)
    if df:
        pred3 = pred_dict['pred3']
        prob_cost3 = pred_dict['prob_cost3']
        pred_norm = (pred3 - cfg['min_disp']) / (cfg['max_disp'] - cfg['min_disp'])
        conf_threshold = (cfg['conf_range'][0] + cfg['conf_range'][1]) / 2.0  # eval
        conf_mask = (conf_map[:, 1:2] > conf_threshold).astype(F32)
        if cfg['mask_to_zero']:
            pred_norm = pred_norm * conf_mask
        df_inputs = [pred_norm, conf_mask]
        if cfg['use_image']:
            df_inputs.append(data_batch['img_l'])
        if cfg['use_off']:
            df_inputs.append(data_batch['img_off_l'])
        if cfg['use_edge']:
            df_inputs.append(data_batch['img_edge_l'])
        if cfg['use_full_volume']:
            df_inputs.append(prob_cost3)
        elif cfg['use_conf_map']:
            df_inputs.append(conf_map)
        df_inputs = lax.stop_gradient(jnp.concatenate(df_inputs, axis=1))
        df_pred = dfnet(params['dfnet'], df_inputs)
        if cfg['df_res']:
            df_pred = jnp.clip(df_pred + pred_norm, 0.0, 1.0)
        if cfg['mix']:
            df_pred = df_pred * (1.0 - conf_mask) + pred_norm * conf_mask
        df_pred = df_pred * (cfg['max_disp'] - cfg['min_disp']) + cfg['min_disp']
        pred_dict['df_pred'] = df_pred
        pred_dict['conf_map'] = conf_map
        pred_dict['conf_mask'] = conf_mask
    else:
        z = jnp.zeros_like(data_batch['img_l'])
        z = jnp.broadcast_to(z, (z.shape[0], cfg['df_in_channels']) + z.shape[2:])
        pred_dict['df_pred'] = dfnet(params['dfnet'], z)
    return pred_dict


# ----------------------------------------------------------------------------
if __name__ == "__main__":
    cfg = dict(min_disp=0.0, max_disp=12.0, num_disp=16, set_zero=True, dilation=1,
               df_channels=16, use_image=True, use_off=False, use_edge=False,
               use_full_volume=False, use_conf_map=True, mask_to_zero=True,
               df_res=True, mix=True, conf_range=(0.5, 0.9))
    df_in_channels = 1 + 1
    if cfg['use_image']:
        df_in_channels += 1
    if cfg['use_off']:
        df_in_channels += 1
    if cfg['use_edge']:
        df_in_channels += 1
    if cfg['use_full_volume']:
        df_in_channels += cfg['num_disp']
    elif cfg['use_conf_map']:
        df_in_channels += 4
    cfg['df_in_channels'] = df_in_channels

    key = jax.random.PRNGKey(0)
    kp, kl, kr = jax.random.split(key, 3)
    params = init_params(kp, df_in_channels, cfg['df_channels'])

    B, Himg, Wimg = 2, 32, 32
    data_batch = {
        'img_l': jax.random.normal(kl, (B, 1, Himg, Wimg), F32),
        'img_r': jax.random.normal(kr, (B, 1, Himg, Wimg), F32),
    }

    pred_dict = psmnet_dilation_df_forward(params, data_batch, cfg, df=True)
    pred_dict = jax.tree_util.tree_map(jax.block_until_ready, pred_dict)

    assert pred_dict['pred3'].shape == (B, 1, Himg, Wimg)
    assert pred_dict['prob_cost3'].shape == (B, cfg['num_disp'], Himg, Wimg)
    assert pred_dict['df_pred'].shape == (B, 1, Himg, Wimg)
    assert pred_dict['conf_map'].shape == (B, 4, Himg, Wimg)
    assert pred_dict['conf_mask'].shape == (B, 1, Himg, Wimg)
    print("KERNEL_OK")
</pallas_src>

<mosaic_0001>
module attributes {stable_mosaic.version = 11 : i64} {
  func.func @_mm_kernel(%arg0: i32, %arg1: memref<256x9xbf16, #tpu.memory_space<vmem>>, %arg2: memref<9x16xbf16, #tpu.memory_space<vmem>>, %arg3: memref<1x16xf32, #tpu.memory_space<vmem>>, %arg4: memref<256x16xbf16, #tpu.memory_space<vmem>>) attributes {dimension_semantics = [#tpu.dimension_semantics<parallel>], iteration_bounds = array<i64: 2>, scalar_prefetch = 0 : i64, scratch_operands = 0 : i64, tpu.core_type = #tpu.core_type<tc>, window_params = [{transform_indices = @transform_0, window_bounds = array<i64: 256, 9>}, {pipeline_mode = #tpu.pipeline_mode<synchronous>, transform_indices = @transform_1, window_bounds = array<i64: 9, 16>}, {pipeline_mode = #tpu.pipeline_mode<synchronous>, transform_indices = @transform_2, window_bounds = array<i64: 1, 16>}, {transform_indices = @transform_3, window_bounds = array<i64: 256, 16>}]} {
    %c0 = arith.constant 0 : index
    %c0_0 = arith.constant 0 : index
    %0 = vector.load %arg1[%c0, %c0_0] : memref<256x9xbf16, #tpu.memory_space<vmem>>, vector<256x9xbf16>
    %c0_1 = arith.constant 0 : index
    %c0_2 = arith.constant 0 : index
    %1 = vector.load %arg2[%c0_1, %c0_2] : memref<9x16xbf16, #tpu.memory_space<vmem>>, vector<9x16xbf16>
    %cst = arith.constant dense<0.000000e+00> : vector<256x16xf32>
    %2 = tpu.matmul %0, %1, %cst {dimension_numbers = #tpu.dot_dimension_numbers<[1], [0], [0], [1], [0, 0, 1, 1], [], []>} : vector<256x9xbf16>, vector<9x16xbf16>, vector<256x16xf32> -> vector<256x16xf32>
    %c0_3 = arith.constant 0 : index
    %c0_4 = arith.constant 0 : index
    %3 = vector.load %arg3[%c0_3, %c0_4] : memref<1x16xf32, #tpu.memory_space<vmem>>, vector<1x16xf32>
    %4 = vector.broadcast %3 : vector<1x16xf32> to vector<256x16xf32>
    %5 = arith.addf %2, %4 : vector<256x16xf32>
    %cst_5 = arith.constant 0.000000e+00 : f32
    %6 = vector.broadcast %cst_5 : f32 to vector<256x16xf32>
    %7 = arith.maximumf %5, %6 : vector<256x16xf32>
    %8 = arith.truncf %7 : vector<256x16xf32> to vector<256x16xbf16>
    %c0_6 = arith.constant 0 : index
    %c0_7 = arith.constant 0 : index
    %9 = vector.load %arg4[%c0_6, %c0_7] : memref<256x16xbf16, #tpu.memory_space<vmem>>, vector<256x16xbf16>
    tpu.vector_store %arg4[%c0_6, %c0_7], %8 {strides = array<i32>} : memref<256x16xbf16, #tpu.memory_space<vmem>>, vector<256x16xbf16>,
    return
  }
  func.func @transform_0(%arg0: i32) -> (i32, i32) {
    %c0_i32 = arith.constant 0 : i32
    %c0_i32_0 = arith.constant 0 : i32
    return %arg0, %c0_i32 : i32, i32
  }
  func.func @transform_1(%arg0: i32) -> (i32, i32) {
    %c0_i32 = arith.constant 0 : i32
    %c0_i32_0 = arith.constant 0 : i32
    %c0_i32_1 = arith.constant 0 : i32
    return %c0_i32, %c0_i32_0 : i32, i32
  }
  func.func @transform_2(%arg0: i32) -> (i32, i32) {
    %c0_i32 = arith.constant 0 : i32
    %c0_i32_0 = arith.constant 0 : i32
    %c0_i32_1 = arith.constant 0 : i32
    return %c0_i32, %c0_i32_0 : i32, i32
  }
  func.func @transform_3(%arg0: i32) -> (i32, i32) {
    %c0_i32 = arith.constant 0 : i32
    %c0_i32_0 = arith.constant 0 : i32
    return %arg0, %c0_i32 : i32, i32
  }
}

</mosaic_0001>

<bundles_post_ra>
// kernel: tpu_custom_call.1
= control target key start
LH: loop header
LB: loop body
LE: loop exit
PB: predicated region body
PF: predicated region fallthrough
CT: control target
= control target key end

     0   :  { %s984_s12 = smov 0   ;;  %s1148_s0 = inlined_call_operand.vmem [shape: bf16[512,9], index: 0, kind: input, shape index: {}]   ;;  %s1149_s1 = inlined_call_operand.vmem [shape: bf16[9,16], index: 1, kind: input, shape index: {}]   ;;  %s1150_s2 = inlined_call_operand.vmem [shape: f32[1,16], index: 2, kind: input, shape index: {}]   ;;  %s1151_s3 = inlined_call_operand.vmem [shape: bf16[512,16], index: 3, kind: output, shape index: {}]  }
   0x1 LB: > { %s767_s13 = sadd.s32 4294967295, %s961_s12   ;;  %p771_p0 = scmp.ge.s32.totalorder %s961_s12, 1  ;;  %s961_s12 = sphi %s984_s12, %s13_s12  }
   0x2   : > { %p138_p1 = scmp.lt.s32.totalorder %s961_s12, 3 }
   0x4   : > { %p139_p2 = pnand %p771_p0, %p138_p1 }
   0x5   : > { %v938_v0 = vld [vmem:[%s1149_s1] sm:$0x1f] (!%p139_p2)   ;;  %vm350_vm0 = vcmask (!%p139_p2), 1043456   ;;  %vm351_vm1 = vcmask (!%p139_p2), 1044480   ;;  %s772_s16 = sshll.u32 (!%p139_p2), %s767_s13, 5  ;;  %v963_v1 = vmov (!%p139_p2), 65535  }
   0x6   : > { %142 = sbr.rel (%p139_p2) target bundleno = 265 (0x109), region = 32  ;;  %v352_v2 = vsel (!%p139_p2), %vm350_vm0, 4294967295, %v963_v1  ;;  %p163_p3 = scmp.lt.s32.totalorder (!%p139_p2), %s772_s16, 63  ;;  %vm301_vm2 = vcmask (!%p139_p2), 72704   ;;  %v1040_v21 = vld [vmem:[%s1150_s2] ss:$0 sm:$0xff] (!%p139_p2) }
   0x7   : > { %v353_v3 = vsel (!%p139_p2), %vm351_vm1, %v352_v2, 0  ;;  %vm678_vm3 = vcmask (!%p139_p2), 125952  }
   0x8   : > { %v355_v4 = vand.u32 (!%p139_p2), %v938_v0, %v353_v3 }
   0xa   : > { %893 = vmatprep.subr.bf16.mxu0 (!%p139_p2), %v355_v4  ;;  %927 = vmatprep.subr.bf16.mxu1 (!%p139_p2), %v355_v4 }
   0xb   : > { %894 = vmatpush3.bf16.msra.mxu0 (!%p139_p2), %v355_v4  ;;  %928 = vmatpush3.bf16.msra.mxu1 (!%p139_p2), %v355_v4 }
   0xd   : > { %s1153_s16 = smov (!%p163_p3, %s772_s16), 63 }
   0xe   : > { %s773_s17 = sshll.u32 %s1153_s16, 2 }
   0xf   : > { %s1003_s20 = scalar_lea.vmem %s1148_s0, %s773_s17  ;;  %s1052_s25 = scalar_lea.vmem %s1151_s3, %s773_s17 }
  0x10   : > { %v939_v5 = vld [vmem:[%s1003_s20] sm:$0xff]   ;;  %v941_v7 = vld [vmem:[%s1003_s20 + $0x8] sm:$0xff]   ;;  %v943_v9 = vld [vmem:[%s1003_s20 + $0x10] sm:$0xff]  }
  0x11   : > { %v940_v6 = vld [vmem:[%s1003_s20 + $0x40] sm:$0xff]   ;;  %895 = vmatprep.mubr.msk.bf16.mxu0 %vm301_vm2, %v939_v5  ;;  %v942_v8 = vld [vmem:[%s1003_s20 + $0x48] sm:$0xff]   ;;  %v944_v10 = vld [vmem:[%s1003_s20 + $0x50] sm:$0xff]  }
  0x12   : > { %911 = vmatprep.mubr.msk.bf16.mxu1 %vm301_vm2, %v940_v6  ;;  %896 = vmatmul.mubr.msk.bf16.vlgmr.msra.gmra.mrb[0].mxu0 %vm301_vm2, %v941_v7  ;;  %v945_v11 = vld [vmem:[%s1003_s20 + $0x18] sm:$0xff]   ;;  %v947_v13 = vld [vmem:[%s1003_s20 + $0x20] sm:$0xff]   ;;  %v949_v15 = vld [vmem:[%s1003_s20 + $0x28] sm:$0xff]  }
  0x13   : > { %912 = vmatmul.mubr.msk.bf16.vlgmr.msra.gmra.mrb[0].mxu1 %vm301_vm2, %v942_v8  ;;  %899 = vmatprep.mubr.msk.bf16.mxu0 %vm301_vm2, %v943_v9  ;;  %v946_v12 = vld [vmem:[%s1003_s20 + $0x58] sm:$0xff]   ;;  %v948_v14 = vld [vmem:[%s1003_s20 + $0x60] sm:$0xff]   ;;  %v950_v16 = vld [vmem:[%s1003_s20 + $0x68] sm:$0xff]  }
  0x14   : > { %915 = vmatprep.mubr.msk.bf16.mxu1 %vm301_vm2, %v944_v10  ;;  %v951_v17 = vld [vmem:[%s1003_s20 + $0x30] sm:$0xff]   ;;  %v953_v19 = vld [vmem:[%s1003_s20 + $0x38] sm:$0xff]  }
  0x15   : > { %v952_v18 = vld [vmem:[%s1003_s20 + $0x70] sm:$0xff]   ;;  %v954_v20 = vld [vmem:[%s1003_s20 + $0x78] sm:$0xff]  }
  0x1a   : > { %900 = vmatmul.mubr.msk.bf16.gmra.mrb[4].mxu0 %vm301_vm2, %v945_v11 }
  0x1b   : > { %916 = vmatmul.mubr.msk.bf16.gmra.mrb[4].mxu1 %vm301_vm2, %v946_v12  ;;  %903 = vmatprep.mubr.msk.bf16.mxu0 %vm301_vm2, %v947_v13 }
  0x1c   : > { %919 = vmatprep.mubr.msk.bf16.mxu1 %vm301_vm2, %v948_v14 }
  0x22   : > { %904 = vmatmul.mubr.msk.bf16.gmra.mrb[8].mxu0 %vm301_vm2, %v949_v15 }
  0x23   : > { %920 = vmatmul.mubr.msk.bf16.gmra.mrb[8].mxu1 %vm301_vm2, %v950_v16  ;;  %907 = vmatprep.mubr.msk.bf16.mxu0 %vm301_vm2, %v951_v17 }
  0x24   : > { %923 = vmatprep.mubr.msk.bf16.mxu1 %vm301_vm2, %v952_v18 }
  0x2a   : > { %908 = vmatmul.mubr.msk.bf16.gmra.mrb[12].mxu0 %vm301_vm2, %v953_v19 }
  0x2b   : > { %924 = vmatmul.mubr.msk.bf16.gmra.mrb[12].mxu1 %vm301_vm2, %v954_v20 }
  0xe5   : > { %v897_v22 = vpop.f32.mrb[0].mxu0 }
  0xe6   : > { %v400_v23 = vadd.f32 %v897_v22, %v1040_v21  ;;  %v913_v24 = vpop.f32.mrb[0].mxu1  ;;  %v391_v25 = vpop.f32.mrb[1].mxu0 }
  0xe7   : > { %v464_v26 = vadd.f32 %v913_v24, %v1040_v21  ;;  %v392_v27 = vadd.f32 %v1040_v21, %v391_v25  ;;  %v455_v28 = vpop.f32.mrb[1].mxu1  ;;  %v898_v29 = vpop.f32.mrb[2].mxu0 }
  0xe8   : > { %v520_v30 = vmax.f32 %v400_v23, 0.0  ;;  %v456_v31 = vadd.f32 %v1040_v21, %v455_v28  ;;  %v403_v32 = vadd.f32 %v898_v29, %v1040_v21  ;;  %v914_v33 = vpop.f32.mrb[2].mxu1  ;;  %v394_v34 = vpop.f32.mrb[3].mxu0 }
  0xe9   : > { %v536_v35 = vmax.f32 %v464_v26, 0.0  ;;  %v518_v36 = vmax.f32 %v392_v27, 0.0  ;;  %v467_v37 = vadd.f32 %v914_v33, %v1040_v21  ;;  %v395_v38 = vadd.f32 %v1040_v21, %v394_v34  ;;  %v458_v39 = vpop.f32.mrb[3].mxu1 }
  0xea   : > { %v846_v40 = vpack.c.bf16 %v520_v30, %v520_v30  ;;  %v534_v41 = vmax.f32 %v456_v31, 0.0  ;;  %v521_v42 = vmax.f32 %v403_v32, 0.0  ;;  %v459_v43 = vadd.f32 %v1040_v21, %v458_v39 }
  0xeb   : > { %v862_v44 = vpack.c.bf16 %v536_v35, %v536_v35  ;;  %v844_v45 = vpack.c.bf16 %v518_v36, %v518_v36  ;;  %v537_v46 = vmax.f32 %v467_v37, 0.0  ;;  %v519_v47 = vmax.f32 %v395_v38, 0.0 }
  0xec   : > { %681 = vst.msk [vmem:[%s1052_s25 + $0x8] sm:$0xf] %vm678_vm3, %v846_v40  ;;  %v860_v48 = vpack.c.bf16 %v534_v41, %v534_v41  ;;  %v847_v49 = vpack.c.bf16 %v521_v42, %v521_v42  ;;  %v535_v50 = vmax.f32 %v459_v43, 0.0 }
  0xed   : > { %697 = vst.msk [vmem:[%s1052_s25 + $0x48] sm:$0xf] %vm678_vm3, %v862_v44  ;;  %679 = vst.msk [vmem:[%s1052_s25] sm:$0xf] %vm678_vm3, %v844_v45  ;;  %v863_v51 = vpack.c.bf16 %v537_v46, %v537_v46  ;;  %v845_v52 = vpack.c.bf16 %v519_v47, %v519_v47  ;;  %v901_v53 = vpop.f32.mrb[4].mxu0 }
  0xee   : > { %695 = vst.msk [vmem:[%s1052_s25 + $0x40] sm:$0xf] %vm678_vm3, %v860_v48  ;;  %682 = vst.msk [vmem:[%s1052_s25 + $0xc] sm:$0xf] %vm678_vm3, %v847_v49  ;;  %v861_v54 = vpack.c.bf16 %v535_v50, %v535_v50  ;;  %v416_v55 = vadd.f32 %v901_v53, %v1040_v21  ;;  %v917_v56 = vpop.f32.mrb[4].mxu1  ;;  %v407_v57 = vpop.f32.mrb[5].mxu0 }
  0xef   : > { %698 = vst.msk [vmem:[%s1052_s25 + $0x4c] sm:$0xf] %vm678_vm3, %v863_v51  ;;  %680 = vst.msk [vmem:[%s1052_s25 + $0x4] sm:$0xf] %vm678_vm3, %v845_v52  ;;  %v480_v58 = vadd.f32 %v917_v56, %v1040_v21  ;;  %v408_v59 = vadd.f32 %v1040_v21, %v407_v57  ;;  %v471_v60 = vpop.f32.mrb[5].mxu1  ;;  %v902_v61 = vpop.f32.mrb[6].mxu0 }
  0xf0   : > { %696 = vst.msk [vmem:[%s1052_s25 + $0x44] sm:$0xf] %vm678_vm3, %v861_v54  ;;  %v524_v62 = vmax.f32 %v416_v55, 0.0  ;;  %v472_v63 = vadd.f32 %v1040_v21, %v471_v60  ;;  %v419_v0 = vadd.f32 %v902_v61, %v1040_v21  ;;  %v918_v1 = vpop.f32.mrb[6].mxu1  ;;  %v410_v2 = vpop.f32.mrb[7].mxu0 }
  0xf1   : > { %v540_v3 = vmax.f32 %v480_v58, 0.0  ;;  %v522_v4 = vmax.f32 %v408_v59, 0.0  ;;  %v483_v5 = vadd.f32 %v918_v1, %v1040_v21  ;;  %v411_v6 = vadd.f32 %v1040_v21, %v410_v2  ;;  %v474_v7 = vpop.f32.mrb[7].mxu1 }
  0xf2   : > { %v850_v8 = vpack.c.bf16 %v524_v62, %v524_v62  ;;  %v538_v9 = vmax.f32 %v472_v63, 0.0  ;;  %v525_v10 = vmax.f32 %v419_v0, 0.0  ;;  %v475_v11 = vadd.f32 %v1040_v21, %v474_v7 }
  0xf3   : > { %v866_v12 = vpack.c.bf16 %v540_v3, %v540_v3  ;;  %v848_v13 = vpack.c.bf16 %v522_v4, %v522_v4  ;;  %v541_v14 = vmax.f32 %v483_v5, 0.0  ;;  %v523_v15 = vmax.f32 %v411_v6, 0.0 }
  0xf4   : > { %685 = vst.msk [vmem:[%s1052_s25 + $0x18] sm:$0xf] %vm678_vm3, %v850_v8  ;;  %v864_v16 = vpack.c.bf16 %v538_v9, %v538_v9  ;;  %v851_v17 = vpack.c.bf16 %v525_v10, %v525_v10  ;;  %v539_v18 = vmax.f32 %v475_v11, 0.0 }
  0xf5   : > { %701 = vst.msk [vmem:[%s1052_s25 + $0x58] sm:$0xf] %vm678_vm3, %v866_v12  ;;  %683 = vst.msk [vmem:[%s1052_s25 + $0x10] sm:$0xf] %vm678_vm3, %v848_v13  ;;  %v867_v19 = vpack.c.bf16 %v541_v14, %v541_v14  ;;  %v849_v20 = vpack.c.bf16 %v523_v15, %v523_v15  ;;  %v905_v22 = vpop.f32.mrb[8].mxu0 }
  0xf6   : > { %699 = vst.msk [vmem:[%s1052_s25 + $0x50] sm:$0xf] %vm678_vm3, %v864_v16  ;;  %686 = vst.msk [vmem:[%s1052_s25 + $0x1c] sm:$0xf] %vm678_vm3, %v851_v17  ;;  %v865_v23 = vpack.c.bf16 %v539_v18, %v539_v18  ;;  %v432_v24 = vadd.f32 %v905_v22, %v1040_v21  ;;  %v921_v25 = vpop.f32.mrb[8].mxu1  ;;  %v423_v26 = vpop.f32.mrb[9].mxu0 }
  0xf7   : > { %702 = vst.msk [vmem:[%s1052_s25 + $0x5c] sm:$0xf] %vm678_vm3, %v867_v19  ;;  %684 = vst.msk [vmem:[%s1052_s25 + $0x14] sm:$0xf] %vm678_vm3, %v849_v20  ;;  %v496_v27 = vadd.f32 %v921_v25, %v1040_v21  ;;  %v424_v28 = vadd.f32 %v1040_v21, %v423_v26  ;;  %v487_v29 = vpop.f32.mrb[9].mxu1  ;;  %v906_v30 = vpop.f32.mrb[10].mxu0 }
  0xf8   : > { %700 = vst.msk [vmem:[%s1052_s25 + $0x54] sm:$0xf] %vm678_vm3, %v865_v23  ;;  %v528_v31 = vmax.f32 %v432_v24, 0.0  ;;  %v488_v32 = vadd.f32 %v1040_v21, %v487_v29  ;;  %v435_v33 = vadd.f32 %v906_v30, %v1040_v21  ;;  %v922_v34 = vpop.f32.mrb[10].mxu1  ;;  %v426_v35 = vpop.f32.mrb[11].mxu0 }
  0xf9   : > { %v544_v36 = vmax.f32 %v496_v27, 0.0  ;;  %v526_v37 = vmax.f32 %v424_v28, 0.0  ;;  %v499_v38 = vadd.f32 %v922_v34, %v1040_v21  ;;  %v427_v39 = vadd.f32 %v1040_v21, %v426_v35  ;;  %v490_v40 = vpop.f32.mrb[11].mxu1 }
  0xfa   : > { %v854_v41 = vpack.c.bf16 %v528_v31, %v528_v31  ;;  %v542_v42 = vmax.f32 %v488_v32, 0.0  ;;  %v529_v43 = vmax.f32 %v435_v33, 0.0  ;;  %v491_v44 = vadd.f32 %v1040_v21, %v490_v40 }
  0xfb   : > { %v870_v45 = vpack.c.bf16 %v544_v36, %v544_v36  ;;  %v852_v46 = vpack.c.bf16 %v526_v37, %v526_v37  ;;  %v545_v47 = vmax.f32 %v499_v38, 0.0  ;;  %v527_v48 = vmax.f32 %v427_v39, 0.0 }
  0xfc   : > { %689 = vst.msk [vmem:[%s1052_s25 + $0x28] sm:$0xf] %vm678_vm3, %v854_v41  ;;  %v868_v49 = vpack.c.bf16 %v542_v42, %v542_v42  ;;  %v855_v50 = vpack.c.bf16 %v529_v43, %v529_v43  ;;  %v543_v51 = vmax.f32 %v491_v44, 0.0 }
  0xfd   : > { %705 = vst.msk [vmem:[%s1052_s25 + $0x68] sm:$0xf] %vm678_vm3, %v870_v45  ;;  %687 = vst.msk [vmem:[%s1052_s25 + $0x20] sm:$0xf] %vm678_vm3, %v852_v46  ;;  %v871_v52 = vpack.c.bf16 %v545_v47, %v545_v47  ;;  %v853_v53 = vpack.c.bf16 %v527_v48, %v527_v48  ;;  %v909_v54 = vpop.f32.mrb[12].mxu0 }
  0xfe   : > { %703 = vst.msk [vmem:[%s1052_s25 + $0x60] sm:$0xf] %vm678_vm3, %v868_v49  ;;  %690 = vst.msk [vmem:[%s1052_s25 + $0x2c] sm:$0xf] %vm678_vm3, %v855_v50  ;;  %v869_v55 = vpack.c.bf16 %v543_v51, %v543_v51  ;;  %v448_v56 = vadd.f32 %v909_v54, %v1040_v21  ;;  %v925_v57 = vpop.f32.mrb[12].mxu1  ;;  %v439_v58 = vpop.f32.mrb[13].mxu0 }
  0xff   : > { %706 = vst.msk [vmem:[%s1052_s25 + $0x6c] sm:$0xf] %vm678_vm3, %v871_v52  ;;  %688 = vst.msk [vmem:[%s1052_s25 + $0x24] sm:$0xf] %vm678_vm3, %v853_v53  ;;  %v512_v59 = vadd.f32 %v925_v57, %v1040_v21  ;;  %v440_v60 = vadd.f32 %v1040_v21, %v439_v58  ;;  %v503_v61 = vpop.f32.mrb[13].mxu1  ;;  %v910_v62 = vpop.f32.mrb[14].mxu0 }
 0x100   : > { %704 = vst.msk [vmem:[%s1052_s25 + $0x64] sm:$0xf] %vm678_vm3, %v869_v55  ;;  %v532_v63 = vmax.f32 %v448_v56, 0.0  ;;  %v504_v0 = vadd.f32 %v1040_v21, %v503_v61  ;;  %v451_v1 = vadd.f32 %v910_v62, %v1040_v21  ;;  %v926_v2 = vpop.f32.mrb[14].mxu1  ;;  %v442_v3 = vpop.f32.mrb[15].mxu0 }
 0x101   : > { %v548_v4 = vmax.f32 %v512_v59, 0.0  ;;  %v530_v5 = vmax.f32 %v440_v60, 0.0  ;;  %v515_v6 = vadd.f32 %v926_v2, %v1040_v21  ;;  %v443_v7 = vadd.f32 %v1040_v21, %v442_v3  ;;  %v506_v8 = vpop.f32.mrb[15].mxu1 }
 0x102   : > { %v858_v9 = vpack.c.bf16 %v532_v63, %v532_v63  ;;  %v546_v10 = vmax.f32 %v504_v0, 0.0  ;;  %v533_v11 = vmax.f32 %v451_v1, 0.0  ;;  %v507_v12 = vadd.f32 %v1040_v21, %v506_v8 }
 0x103   : > { %v874_v13 = vpack.c.bf16 %v548_v4, %v548_v4  ;;  %v856_v14 = vpack.c.bf16 %v530_v5, %v530_v5  ;;  %v549_v15 = vmax.f32 %v515_v6, 0.0  ;;  %v531_v16 = vmax.f32 %v443_v7, 0.0 }
 0x104   : > { %693 = vst.msk [vmem:[%s1052_s25 + $0x38] sm:$0xf] %vm678_vm3, %v858_v9  ;;  %v872_v17 = vpack.c.bf16 %v546_v10, %v546_v10  ;;  %v859_v18 = vpack.c.bf16 %v533_v11, %v533_v11  ;;  %v547_v19 = vmax.f32 %v507_v12, 0.0 }
 0x105   : > { %709 = vst.msk [vmem:[%s1052_s25 + $0x78] sm:$0xf] %vm678_vm3, %v874_v13  ;;  %691 = vst.msk [vmem:[%s1052_s25 + $0x30] sm:$0xf] %vm678_vm3, %v856_v14  ;;  %v875_v20 = vpack.c.bf16 %v549_v15, %v549_v15  ;;  %v857_v22 = vpack.c.bf16 %v531_v16, %v531_v16 }
 0x106   : > { %707 = vst.msk [vmem:[%s1052_s25 + $0x70] sm:$0xf] %vm678_vm3, %v872_v17  ;;  %694 = vst.msk [vmem:[%s1052_s25 + $0x3c] sm:$0xf] %vm678_vm3, %v859_v18  ;;  %v873_v21 = vpack.c.bf16 %v547_v19, %v547_v19 }
 0x107   : > { %710 = vst.msk [vmem:[%s1052_s25 + $0x7c] sm:$0xf] %vm678_vm3, %v875_v20  ;;  %692 = vst.msk [vmem:[%s1052_s25 + $0x34] sm:$0xf] %vm678_vm3, %v857_v22 }
 0x108   : > { %708 = vst.msk [vmem:[%s1052_s25 + $0x74] sm:$0xf] %vm678_vm3, %v873_v21 }
 0x109 PF: > { %s13_s12 = sadd.s32 1, %s961_s12  }
 0x10a   : > { %p10_p4 = scmp.ge.s32.totalorder %s13_s12, 4  }
 0x10c   :  { %12 = sbr.rel (!%p10_p4) target bundleno = 1 (0x1), region = 62 }

</bundles_post_ra>
